<compile_context>
chip_gen: v7x
topology: tpu7x:2x2x1
jax: 0.10.0
libtpu: 0.0.40
codegen_flags: <defaults>
</compile_context>

<pallas_src>
import math
import numpy as np

import jax
import jax.numpy as jnp
from jax.experimental import pallas as pl
from jax.experimental.pallas import tpu as pltpu


# ----------------------------------------------------------------------------
# Interpolation weight matrices (mirroring PyTorch's upsample index formulas)
# ----------------------------------------------------------------------------
def _nearest_matrix(in_size: int, out_size: int, scale: float) -> np.ndarray:
    """out[i] = in[min(floor(i * scale), in_size - 1)]  (PyTorch 'nearest')."""
    dst = np.arange(out_size)
    src = np.floor(dst * scale).astype(np.int64)
    src = np.clip(src, 0, in_size - 1)
    w = np.zeros((out_size, in_size), dtype=np.float32)
    w[dst, src] = 1.0
    return w


def _bilinear_matrix(in_size: int, out_size: int, scale: float,
                     align_corners: bool) -> np.ndarray:
    """1-D linear interpolation weights (PyTorch 'bilinear', no antialias)."""
    dst = np.arange(out_size, dtype=np.float64)
    if align_corners:
        s = (in_size - 1) / (out_size - 1) if out_size > 1 else 0.0
        src = dst * s
    else:
        src = (dst + 0.5) * scale - 0.5
        src = np.maximum(src, 0.0)
    lo = np.floor(src).astype(np.int64)
    lo = np.clip(lo, 0, in_size - 1)
    hi = np.minimum(lo + 1, in_size - 1)
    w_hi = (src - lo).astype(np.float32)
    w_lo = 1.0 - w_hi
    w = np.zeros((out_size, in_size), dtype=np.float32)
    np.add.at(w, (np.arange(out_size), lo), w_lo)
    np.add.at(w, (np.arange(out_size), hi), w_hi)
    return w


# ----------------------------------------------------------------------------
# Pallas kernel: separable resample, channel/batch planes fused into the matmuls
# ----------------------------------------------------------------------------
def _resample_kernel(x_ref, wh_ref, ww_ref, o_ref):
    # x_ref : (TC*Hin, Win)   -- TC (batch*channel) planes stacked along rows
    # wh_ref: (Hout, Hin)     -- H interpolation weights
    # ww_ref: (Win, Wout)     -- W interpolation weights (already transposed)
    # o_ref : (TC, Hout, Wout)
    tc, hout, wout = o_ref.shape
    hin = wh_ref.shape[1]

    # Pass 1 (W): one fused matmul with M = TC*Hin (no per-channel loop).
    t = jnp.dot(x_ref[...], ww_ref[...], preferred_element_type=jnp.float32)
    t = t.reshape(tc, hin, wout).astype(x_ref.dtype)          # (TC, Hin, Wout)

    # Pass 2 (H): batched matmul over the plane axis ('bqk,bkd->bqd' pattern).
    wh_b = jnp.broadcast_to(wh_ref[...], (tc, hout, hin))     # hoisted, no loop
    out = jnp.einsum("pok,pkw->pow", wh_b, t,
                     preferred_element_type=jnp.float32)      # (TC, Hout, Wout)
    o_ref[...] = out.astype(o_ref.dtype)


def _choose_plane_tile(nc, hin, win, hout, wout, esz):
    """Largest plane tile TC that (a) divides N*C, (b) keeps the double-buffered
    blocks + f32 intermediates under ~16 MiB (safe for v7x's 64 MiB VMEM / 32 MiB
    scoped default), (c) keeps the block's second-minor dim tile-aligned, and
    (d) leaves >= 2 grid steps when possible so both v7x TensorCores get work."""
    budget = 16 * 1024 * 1024
    sub = {4: 8, 2: 16, 1: 32}.get(esz, 8)   # sublane tiling per element size

    def fits(tc):
        b = (2 * tc * hin * win * esz          # double-buffered input block
             + 2 * tc * hout * wout * esz      # double-buffered output block
             + tc * hin * wout * 4             # f32 W-pass intermediate
             + tc * hout * hin * esz           # broadcast H weights
             + tc * hout * wout * 4)           # f32 accumulator
        return b <= budget

    valid = [d for d in range(1, nc + 1)
             if nc % d == 0 and ((d * hin) % sub == 0 or d == nc) and fits(d)]
    if not valid:
        valid = [1] if hin % sub == 0 else [nc]
    multi = [d for d in valid if nc // d >= 2]
    return max(multi) if multi else max(valid)


@jax.jit
def _resample_pallas(x, wh, ww):
    """x: (N, C, Hin, Win); wh: (Hout, Hin); ww: (Win, Wout) -> (N, C, Hout, Wout)."""
    n, c, hin, win = x.shape
    hout = wh.shape[0]
    wout = ww.shape[1]
    nc = n * c
    esz = jnp.dtype(x.dtype).itemsize
    tc = _choose_plane_tile(nc, hin, win, hout, wout, esz)

    x2d = x.reshape(nc * hin, win)   # free row-major reshape in XLA

    out = pl.pallas_call(
        _resample_kernel,
        out_shape=jax.ShapeDtypeStruct((nc, hout, wout), x.dtype),
        grid=(nc // tc,),
        in_specs=[
            pl.BlockSpec((tc * hin, win), lambda i: (i, 0)),
            pl.BlockSpec((hout, hin), lambda i: (0, 0)),
            pl.BlockSpec((win, wout), lambda i: (0, 0)),
        ],
        out_specs=pl.BlockSpec((tc, hout, wout), lambda i: (i, 0, 0)),
        compiler_params=pltpu.CompilerParams(
            dimension_semantics=("parallel",),
            vmem_limit_bytes=32 * 1024 * 1024,
        ),
    )(x2d, wh, ww)
    return out.reshape(n, c, hout, wout)


# ----------------------------------------------------------------------------
# Module-equivalent wrapper (2-D NCHW path of mon.nn.modules.scale.Downsample)
# ----------------------------------------------------------------------------
class Downsample:
    def __init__(self, size=None, scale_factor=None, mode="nearest",
                 align_corners=False, recompute_scale_factor=False):
        self.size = size
        self.scale_factor = self._invert_scale_factor(scale_factor)
        self.mode = mode
        self.align_corners = align_corners
        self.recompute_scale_factor = recompute_scale_factor
        self._weight_cache = {}
        # TODO(synk): 1D ('linear') / 3D ('trilinear') / 'bicubic' modes are not implemented.

    @staticmethod
    def _invert_scale_factor(scale_factor):
        if isinstance(scale_factor, tuple):
            return tuple(1.0 / f for f in scale_factor)
        return 1.0 / scale_factor if scale_factor else None

    def _weights(self, in_size, out_size, scale, dtype):
        key = (self.mode, in_size, out_size, float(scale), self.align_corners, str(dtype))
        w = self._weight_cache.get(key)
        if w is None:
            if self.mode == "nearest":
                w_np = _nearest_matrix(in_size, out_size, scale)
            elif self.mode == "bilinear":
                w_np = _bilinear_matrix(in_size, out_size, scale, self.align_corners)
            else:
                raise NotImplementedError(f"mode={self.mode!r} not supported by this kernel")
            w = jnp.asarray(w_np, dtype=dtype)
            self._weight_cache[key] = w
        return w

    def __call__(self, x: jax.Array) -> jax.Array:
        n, c, hin, win = x.shape

        # identity short-circuits (mirrors the PyTorch forward; safe for int `size`)
        if self.size and self.size == list(x.shape[2:]):
            return x
        if (self.scale_factor and isinstance(self.scale_factor, tuple)
                and all(s == 1.0 for s in self.scale_factor)):
            return x

        # resolve output size and the per-axis index scale (PyTorch semantics:
        # scale_factor given & not recomputed -> scale = 1/sf ; otherwise in/out).
        if self.size is not None:
            size = self.size if isinstance(self.size, (tuple, list)) else (self.size, self.size)
            hout, wout = int(size[0]), int(size[1])
            scale_h, scale_w = hin / hout, win / wout
        else:
            sf = self.scale_factor
            sf = sf if isinstance(sf, tuple) else (sf, sf)
            hout = int(math.floor(hin * sf[0]))
            wout = int(math.floor(win * sf[1]))
            if self.recompute_scale_factor:
                scale_h, scale_w = hin / hout, win / wout
            else:
                scale_h, scale_w = 1.0 / sf[0], 1.0 / sf[1]

        # Fast path (perf review): integer-stride nearest is pure data movement ->
        # strided slice, no MXU / matmul work at all.
        if self.mode == "nearest":
            if (float(scale_h).is_integer() and float(scale_w).is_integer()
                    and scale_h >= 1.0 and scale_w >= 1.0):
                sh, sw = int(scale_h), int(scale_w)
                return x[:, :, ::sh, ::sw][:, :, :hout, :wout]

        # General path: separable resample as two fused/batched matmuls in Pallas.
        if jnp.issubdtype(x.dtype, jnp.floating):
            compute_dtype = x.dtype          # bf16 stays bf16 (f32 accumulation in-kernel)
            xc = x
        else:
            # TODO(synk): integer dtypes on the non-integer-stride path round-trip via f32.
            compute_dtype = jnp.float32
            xc = x.astype(jnp.float32)

        wh = self._weights(hin, hout, scale_h, compute_dtype)        # (Hout, Hin)
        ww = self._weights(win, wout, scale_w, compute_dtype).T      # (Win, Wout)
        out = _resample_pallas(xc, wh, ww)
        return out.astype(x.dtype)


# ----------------------------------------------------------------------------
if __name__ == "__main__":
    key = jax.random.PRNGKey(0)
    N, C, H, W = 2, 4, 16, 16
    x = jax.random.normal(key, (N, C, H, W), dtype=jnp.float32)

    # 1) nearest, integer stride -> strided-slice fast path (DMA-only, no MXU)
    y_nn = jax.block_until_ready(Downsample(scale_factor=2, mode="nearest")(x))
    ref_nn = x[:, :, ::2, ::2]
    assert y_nn.shape == (N, C, H // 2, W // 2), y_nn.shape
    np.testing.assert_allclose(np.asarray(y_nn), np.asarray(ref_nn), rtol=0, atol=0)

    # 2) bilinear -> Pallas separable-matmul kernel; reference via the same weights in numpy
    y_bl = jax.block_until_ready(Downsample(scale_factor=2, mode="bilinear")(x))
    wh_np = _bilinear_matrix(H, H // 2, 2.0, False).astype(np.float64)
    ww_np = _bilinear_matrix(W, W // 2, 2.0, False).astype(np.float64)
    ref_bl = np.einsum("oh,nchw,kw->ncok", wh_np, np.asarray(x, dtype=np.float64), ww_np)
    assert y_bl.shape == (N, C, H // 2, W // 2), y_bl.shape
    np.testing.assert_allclose(np.asarray(y_bl), ref_bl, rtol=1e-4, atol=1e-4)

    # 3) nearest to a non-integer-stride size -> exercises the Pallas kernel's nearest path
    y_sz = jax.block_until_ready(Downsample(size=(7, 5), mode="nearest")(x))
    idx_h = np.minimum(np.floor(np.arange(7) * (H / 7)).astype(int), H - 1)
    idx_w = np.minimum(np.floor(np.arange(5) * (W / 5)).astype(int), W - 1)
    ref_sz = np.asarray(x)[:, :, idx_h][:, :, :, idx_w]
    assert y_sz.shape == (N, C, 7, 5), y_sz.shape
    np.testing.assert_allclose(np.asarray(y_sz), ref_sz, rtol=1e-5, atol=1e-5)

    # 4) bf16 input stays bf16 through the MXU (loose tolerance sanity check)
    y_bf = jax.block_until_ready(
        Downsample(scale_factor=2, mode="bilinear")(x.astype(jnp.bfloat16)))
    assert y_bf.dtype == jnp.bfloat16 and y_bf.shape == (N, C, H // 2, W // 2)
    np.testing.assert_allclose(np.asarray(y_bf, dtype=np.float32), ref_bl,
                               rtol=1e-1, atol=1e-1)

    print("KERNEL_OK")
</pallas_src>

<mosaic_0001>
module attributes {stable_mosaic.version = 11 : i64} {
  func.func @_resample_kernel(%arg0: i32, %arg1: memref<64x16xf32, #tpu.memory_space<vmem>>, %arg2: memref<8x16xf32, #tpu.memory_space<vmem>>, %arg3: memref<16x8xf32, #tpu.memory_space<vmem>>, %arg4: memref<4x8x8xf32, #tpu.memory_space<vmem>>) attributes {dimension_semantics = [#tpu.dimension_semantics<parallel>], iteration_bounds = array<i64: 2>, scalar_prefetch = 0 : i64, scratch_operands = 0 : i64, tpu.core_type = #tpu.core_type<tc>, window_params = [{transform_indices = @transform_0, window_bounds = array<i64: 64, 16>}, {pipeline_mode = #tpu.pipeline_mode<synchronous>, transform_indices = @transform_1, window_bounds = array<i64: 8, 16>}, {pipeline_mode = #tpu.pipeline_mode<synchronous>, transform_indices = @transform_2, window_bounds = array<i64: 16, 8>}, {transform_indices = @transform_3, window_bounds = array<i64: 4, 8, 8>}]} {
    %c0 = arith.constant 0 : index
    %c0_0 = arith.constant 0 : index
    %0 = vector.load %arg1[%c0, %c0_0] : memref<64x16xf32, #tpu.memory_space<vmem>>, vector<64x16xf32>
    %c0_1 = arith.constant 0 : index
    %c0_2 = arith.constant 0 : index
    %1 = vector.load %arg3[%c0_1, %c0_2] : memref<16x8xf32, #tpu.memory_space<vmem>>, vector<16x8xf32>
    %cst = arith.constant dense<0.000000e+00> : vector<64x8xf32>
    %2 = tpu.matmul %0, %1, %cst {dimension_numbers = #tpu.dot_dimension_numbers<[1], [0], [0], [1], [0, 0, 1, 1], [], []>} : vector<64x16xf32>, vector<16x8xf32>, vector<64x8xf32> -> vector<64x8xf32>
    %3 = vector.shape_cast %2 : vector<64x8xf32> to vector<4x16x8xf32>
    %c0_3 = arith.constant 0 : index
    %c0_4 = arith.constant 0 : index
    %4 = vector.load %arg2[%c0_3, %c0_4] : memref<8x16xf32, #tpu.memory_space<vmem>>, vector<8x16xf32>
    %5 = vector.shape_cast %4 : vector<8x16xf32> to vector<1x8x16xf32>
    %6 = vector.broadcast %5 : vector<1x8x16xf32> to vector<4x8x16xf32>
    "tpu.trace_start"() <{level = 10 : i32, message = "pok,pkw->pow"}> : () -> ()
    %cst_5 = arith.constant dense<0.000000e+00> : vector<4x8x8xf32>
    %7 = tpu.matmul %6, %3, %cst_5 {dimension_numbers = #tpu.dot_dimension_numbers<[2], [1], [1], [2], [0, 0, 0, 1, 1, 2], [0], [0]>} : vector<4x8x16xf32>, vector<4x16x8xf32>, vector<4x8x8xf32> -> vector<4x8x8xf32>
    "tpu.trace_stop"() : () -> ()
    %c0_6 = arith.constant 0 : index
    %c0_7 = arith.constant 0 : index
    %c0_8 = arith.constant 0 : index
    %8 = vector.load %arg4[%c0_6, %c0_7, %c0_8] : memref<4x8x8xf32, #tpu.memory_space<vmem>>, vector<4x8x8xf32>
    tpu.vector_store %arg4[%c0_6, %c0_7, %c0_8], %7 {strides = array<i32>} : memref<4x8x8xf32, #tpu.memory_space<vmem>>, vector<4x8x8xf32>,
    return
  }
  func.func @transform_0(%arg0: i32) -> (i32, i32) {
    %c0_i32 = arith.constant 0 : i32
    %c0_i32_0 = arith.constant 0 : i32
    return %arg0, %c0_i32 : i32, i32
  }
  func.func @transform_1(%arg0: i32) -> (i32, i32) {
    %c0_i32 = arith.constant 0 : i32
    %c0_i32_0 = arith.constant 0 : i32
    %c0_i32_1 = arith.constant 0 : i32
    return %c0_i32, %c0_i32_0 : i32, i32
  }
  func.func @transform_2(%arg0: i32) -> (i32, i32) {
    %c0_i32 = arith.constant 0 : i32
    %c0_i32_0 = arith.constant 0 : i32
    %c0_i32_1 = arith.constant 0 : i32
    return %c0_i32, %c0_i32_0 : i32, i32
  }
  func.func @transform_3(%arg0: i32) -> (i32, i32, i32) {
    %c0_i32 = arith.constant 0 : i32
    %c0_i32_0 = arith.constant 0 : i32
    %c0_i32_1 = arith.constant 0 : i32
    return %arg0, %c0_i32, %c0_i32_0 : i32, i32, i32
  }
}

</mosaic_0001>

<bundles_post_ra>
// kernel: _resample_pallas.1
= control target key start
LH: loop header
LB: loop body
LE: loop exit
PB: predicated region body
PF: predicated region fallthrough
CT: control target
= control target key end

     0   :  { %8 = vsyncpa [#allocation3], 0  ;;  %s1189_s0 = inlined_call_operand.hbm [shape: f32[128,16], index: 0, kind: input, shape index: {}]   ;;  %s1190_s1 = inlined_call_operand.vmem [shape: f32[8,16], index: 1, kind: input, shape index: {}]   ;;  %s1191_s2 = inlined_call_operand.vmem [shape: f32[16,8], index: 2, kind: input, shape index: {}]   ;;  %s1192_s3 = inlined_call_operand.hbm [shape: f32[8,8,8], index: 3, kind: output, shape index: {}]  }
   0x1   :  { %10 = vsyncpa [#allocation3 + $0x1], 0 }
   0x2   :  { %11 = vsyncpa [#allocation4], 0 }
   0x3   :  { %13 = vsyncpa [#allocation4 + $0x1], 0  ;;  %s997_s12 = smov 0   ;;  %s999_s13 = smov 0  }
   0x4   :  { %s1001_s14 = smov 0   ;;  %s1003_s15 = smov 0  }
   0x5 LB: > { %s1018_s16 = sadd.s32 4294967295, %s966_s15   ;;  %s707_s17 = sadd.s32 4294967294, %s966_s15   ;;  %s966_s15 = sphi %s1003_s15, %s1205_s15   ;;  %s962_s14 = sphi %s1001_s14, %s1204_s14   ;;  %s958_s13 = sphi %s999_s13, %s1203_s13   ;;  %s954_s12 = sphi %s997_s12, %s1202_s12  }
   0x6   : > { %s1022_s18 = sadd.s32 1, %s966_s15   ;;  %s26_s19 = sadd.s32 1, %s962_s14 }
   0x7   : > { %s23_s20 = ssub.s32 %s966_s15, %s1022_s18  ;;  %p33_p0 = scmp.ne.s32.totalorder %s962_s14, %s958_s13 }
   0x8   : > { %p24_p1 = scmp.eq.s32.totalorder %s23_s20, 0  ;;  %p34_p2 = scmp.eq.s32.totalorder %s966_s15, 0 }
   0x9   : > { %p39_p3 = scmp.ne.s32.totalorder %s958_s13, %s954_s12  ;;  %p40_p4 = scmp.eq.s32.totalorder %s1018_s16, 0 }
   0xa   : > { %s1034_s21 = scalar_select %p24_p1, %s962_s14, %s26_s19  }
   0xb   : > { %p1036_p5 = por %p34_p2, %p33_p0  ;;  %p1040_p6 = por %p40_p4, %p39_p3 }
   0xc   : > { %p105_p7 = scmp.eq.s32.totalorder %s1018_s16, 1  ;;  %p111_p8 = scmp.eq.s32.totalorder %s707_s17, 1 }
   0xd   : > { %p829_p10 = scmp.lt.s32.totalorder %s966_s15, 2  ;;  %s137_s26 = sand.u32 1, %s962_s14  }
   0xe   : > { %p1047_p11 = por %p105_p7, %p33_p0  ;;  %p1051_p12 = por %p111_p8, %p39_p3 }
   0xf   : > { %s733_s27 = sshll.u32 %s966_s15, 10  ;;  %s710_s28 = sshll.u32 %s137_s26, 6 }
  0x10   : > { %s1196_s24 = scalar_select %p1047_p11, 1, 0 }
  0x11   : > { %s1197_s25 = scalar_select %p1051_p12, 1, 0 }
  0x12   : > { %s1060_s4 = scalar_lea.hbm %s1189_s0, %s733_s27  ;;  %s141_s5 = scalar_lea.vmem [#allocation2], %s710_s28 }
  0x13   : > { %s148_s6 = sshll.u32 %s141_s5, 4  ;;  %p1064_p13 = pnand %p829_p10, %p1036_p5  ;;  %s1068_s6 = int_to_ptr.vmem [resolvable:$true] %s148_s6 }
  0x14   : > { %s1070_s8 = scalar_lea.sflag [#allocation3], %s137_s26  ;;  %s870_s9 = scalar_lea.hbm %s1060_s4, 1024 }
  0x15   : > { %p871_p0 = scmp.ne.s32.totalorder %s1060_s4, %s870_s9  ;;  %p872_p1 = pneg %p1064_p13 }
  0x16   : > { %s875_s17 = scalar_lea.hbm %s1189_s0, 2048  ;;  %p876_p4 = scmp.lt.u32.totalorder %s1060_s4, %s1189_s0 }
  0x17   : > { %p873_p2 = pnand %p872_p1, %p871_p0  ;;  %p877_p5 = scmp.lt.u32.totalorder %s875_s17, %s870_s9 }
  0x18   : > { %p879_p8 = scmp.lt.u32.totalorder %s870_s9, %s1060_s4 }
  0x19   : > { %p874_p3 = pneg %p873_p2  ;;  %p878_p7 = por %p877_p5, %p876_p4 }
  0x1b   : > { %p880_p10 = por %p879_p8, %p878_p7 }
  0x1d   : > { %p881_p9 = pnand %p880_p10, %p874_p3 }
  0x1f   : > { %884 = shalt.err (!%p881_p9)
}
  0x20   : > { %s885_s22 = scalar_lea.vmem %s1068_s6, 1024  ;;  %s968_s26 = smov [#allocation2]  }
  0x21   : > { %p886_p0 = scmp.ne.s32.totalorder %s1068_s6, %s885_s22  ;;  %s890_s27 = sshll.u32 %s968_s26, 4  ;;  %s891_s27 = int_to_ptr.vmem [resolvable:$false] %s890_s27 }
  0x22   : > { %s892_s28 = scalar_lea.vmem %s891_s27, 2048  ;;  %p893_p11 = scmp.lt.s32.totalorder %s1068_s6, %s891_s27 }
  0x23   : > { %p888_p2 = pnand %p886_p0, %p872_p1  ;;  %p894_p4 = scmp.lt.s32.totalorder %s892_s28, %s885_s22 }
  0x25   : > { %p889_p12 = pneg %p888_p2  ;;  %p895_p5 = por %p894_p4, %p893_p11 }
  0x27   : > { %p896_p7 = pnand %p895_p5, %p889_p12 }
  0x29   : > { %899 = shalt.err (!%p896_p7)
}
  0x2a   : > { %s969_s29 = smov 128   ;;  %s970_s30 = smov 8  }
  0x2b   : > { %824 = dma.hbm_to_vmem [thread:$0]  (!%p1064_p13), %s1060_s4, 1024, %s1068_s6, %s1070_s8, %s969_s29, %s969_s29, %s970_s30  }
  0x2c   : > { %p713_p9 = scmp.ge.s32.totalorder %s966_s15, 1  ;;  %p156_p1 = scmp.lt.s32.totalorder %s966_s15, 3 }
  0x2e   : > { %p157_p3 = pnand %p713_p9, %p156_p1 }
  0x2f   : > { %s1101_s5 = sand.u32 (!%p157_p3), 1, %s958_s13  }
  0x30   : > { %160 = sbr.rel (%p157_p3) target bundleno = 520 (0x208), region = 32  ;;  %s714_s9 = sshll.u32 (!%p157_p3), %s1101_s5, 6 }
  0x31   : > { %s163_s10 = scalar_lea.sflag (!%p157_p3), [#allocation3], %s1101_s5  ;;  %s166_s11 = scalar_lea.vmem (!%p157_p3), [#allocation2], %s714_s9 }
  0x37   : > { %945 = dma.done.wait (%p1040_p6), %s163_s10, 1024  }
  0x38   : > { %947 = vsyncadd (%p1040_p6), %s163_s10, 4294966272  ;;  %vm201_vm0 = vcmask 130048   ;;  %v199_v0 = vld [vmem:[%s1191_s2] sm:$0xff]  ;;  %v200_v1 = vld [vmem:[%s1191_s2 + $0x8] sm:$0xff]  ;;  %v971_v11 = vmov 0.0|0.0   ;;  %vm972_vm1 = vmmov 0  }
  0x39   : > { %v191_v2 = vld [vmem:[%s166_s11] sm:$0xff]  ;;  %v801_v3 = vpack.c.bf16 %v200_v1, %v199_v0  ;;  %v192_v4 = vld [vmem:[%s166_s11 + $0x8] sm:$0xff]  ;;  %v193_v5 = vld [vmem:[%s166_s11 + $0x10] sm:$0xff]  ;;  %805 = vmatprep.subr.bf16.mxu1 %v971_v11  ;;  %v973_v12 = vmov 0.0   ;;  %s715_s19 = sshll.u32 %s1101_s5, 5  ;;  %vm615_vm2 = vcmask 64512  }
  0x3a   : > { %761 = vmatprep.mubr.msk.f32.mxu0 %vm201_vm0, %v191_v2  ;;  %v194_v6 = vld [vmem:[%s166_s11 + $0x18] sm:$0xff]  ;;  %v195_v7 = vld [vmem:[%s166_s11 + $0x20] sm:$0xff]  ;;  %v196_v8 = vld [vmem:[%s166_s11 + $0x28] sm:$0xff]  ;;  %777 = vmatprep.mubr.msk.f32.mxu1 %vm972_vm1, %v973_v12  ;;  %s188_s20 = scalar_lea.vmem [#allocation5], %s715_s19  ;;  %s734_s26 = sshll.u32 %s1018_s16, 9 }
  0x3b   : > { %802 = vmatprep.subr.bf16.mxu0 %v801_v3  ;;  %v197_v9 = vld [vmem:[%s166_s11 + $0x30] sm:$0xff]  ;;  %v198_v10 = vld [vmem:[%s166_s11 + $0x38] sm:$0xff]  ;;  %v331_v17 = vld [vmem:[%s1190_s1] sm:$0xff]  ;;  %s634_s22 = sshll.u32 %s188_s20, 4  ;;  %s1144_s29 = scalar_lea.hbm %s1192_s3, %s734_s26  ;;  %s1138_s22 = int_to_ptr.vmem [resolvable:$true] %s634_s22 }
  0x3c   : > { %804 = vmatpush3.bf16.msra.mxu0 %v801_v3  ;;  %s621_s30 = scalar_lea.sflag [#allocation4], %s1101_s5  ;;  %s900_s16 = scalar_lea.vmem %s1138_s22, 512 }
  0x3d   : > { %p901_p6 = scmp.ne.s32.totalorder %s1138_s22, %s900_s16  ;;  %p1199_p11 = scmp.ne.s32.totalorder %s1196_s24, 0 }
  0x3e   : > { %s974_s9 = smov [#allocation5]  }
  0x3f   : > { %762 = vmatmul.mubr.msk.f32.vlgmr.msra.gmra.mrb[0].mxu0 %vm201_vm0, %v192_v4  ;;  %p902_p12 = pnand %p901_p6, %p1199_p11  ;;  %s904_s10 = sshll.u32 %s974_s9, 4  ;;  %s905_s10 = int_to_ptr.vmem [resolvable:$false] %s904_s10 }
  0x40   : > { %764 = vmatprep.mubr.msk.f32.mxu0 %vm201_vm0, %v193_v5  ;;  %s906_s11 = scalar_lea.vmem %s905_s10, 1024  ;;  %p907_p8 = scmp.lt.s32.totalorder %s1138_s22, %s905_s10 }
  0x41   : > { %p903_p13 = pneg %p902_p12  ;;  %p908_p10 = scmp.lt.s32.totalorder %s906_s11, %s900_s16 }
  0x43   : > { %765 = vmatmul.mubr.msk.f32.gmra.mrb[2].mxu0 %vm201_vm0, %v194_v6  ;;  %p909_p0 = por %p908_p10, %p907_p8 }
  0x44   : > { %767 = vmatprep.mubr.msk.f32.mxu0 %vm201_vm0, %v195_v7 }
  0x45   : > { %p910_p2 = pnand %p909_p0, %p903_p13 }
  0x47   : > { %768 = vmatmul.mubr.msk.f32.gmra.mrb[4].mxu0 %vm201_vm0, %v196_v8 }
  0x48   : > { %770 = vmatprep.mubr.msk.f32.mxu0 %vm201_vm0, %v197_v9 }
  0x4b   : > { %771 = vmatmul.mubr.msk.f32.gmra.mrb[6].mxu0 %vm201_vm0, %v198_v10 }
 0x112   : > { %v763_v13 = vpop.f32.mrb[0].mxu0 }
 0x113   : > { %v292_v14 = vpop.f32.mrb[1].mxu0 }
 0x114   : > { %v806_v15 = vpack.c.bf16 %v763_v13, %v292_v14 }
 0x116   : > { %v766_v16 = vpop.f32.mrb[2].mxu0  ;;  %807 = vmatpush3.bf16.msra.mxu1 %v806_v15 }
 0x117   : > { %v302_v18 = vpop.f32.mrb[3].mxu0  ;;  %808 = vmatprep.subr.bf16.mxu1 %v971_v11 }
 0x118   : > { %v809_v19 = vpack.c.bf16 %v766_v16, %v302_v18 }
 0x119   : > { %778 = vmatmul.mubr.msk.f32.vlgmr.msra.gmra.mrb[0].mxu1 %vm201_vm0, %v331_v17 }
 0x11a   : > { %v769_v20 = vpop.f32.mrb[4].mxu0  ;;  %810 = vmatpush3.bf16.msra.mxu1 %v809_v19  ;;  %784 = vmatprep.mubr.msk.f32.mxu1 %vm972_vm1, %v973_v12 }
 0x11b   : > { %v312_v21 = vpop.f32.mrb[5].mxu0  ;;  %811 = vmatprep.subr.bf16.mxu1 %v971_v11 }
 0x11c   : > { %v812_v22 = vpack.c.bf16 %v769_v20, %v312_v21 }
 0x11d   : > { %785 = vmatmul.mubr.msk.f32.vlgmr.msra.gmra.mrb[2].mxu1 %vm201_vm0, %v331_v17 }
 0x11e   : > { %v772_v23 = vpop.f32.mrb[6].mxu0  ;;  %813 = vmatpush3.bf16.msra.mxu1 %v812_v22  ;;  %791 = vmatprep.mubr.msk.f32.mxu1 %vm972_vm1, %v973_v12 }
 0x11f   : > { %v322_v24 = vpop.f32.mrb[7].mxu0  ;;  %814 = vmatprep.subr.bf16.mxu1 %v971_v11 }
 0x120   : > { %v815_v25 = vpack.c.bf16 %v772_v23, %v322_v24 }
 0x121   : > { %792 = vmatmul.mubr.msk.f32.vlgmr.msra.gmra.mrb[4].mxu1 %vm201_vm0, %v331_v17 }
 0x122   : > { %816 = vmatpush3.bf16.msra.mxu1 %v815_v25  ;;  %798 = vmatprep.mubr.msk.f32.mxu1 %vm972_vm1, %v973_v12 }
 0x125   : > { %799 = vmatmul.mubr.msk.f32.vlgmr.msra.gmra.mrb[6].mxu1 %vm201_vm0, %v331_v17 }
 0x1ec   : > { %v401_v26 = vpop.f32.mrb[0].mxu1 }
 0x1ed   : > { %616 = vst.msk [vmem:[%s188_s20] sm:$0xff] %vm615_vm2, %v401_v26  ;;  %v779_v27 = vpop.f32.mrb[1].mxu1 }
 0x1f0   : > { %v471_v28 = vpop.f32.mrb[2].mxu1 }
 0x1f1   : > { %617 = vst.msk [vmem:[%s188_s20 + $0x8] sm:$0xff] %vm615_vm2, %v471_v28  ;;  %v786_v29 = vpop.f32.mrb[3].mxu1 }
 0x1f4   : > { %v541_v30 = vpop.f32.mrb[4].mxu1 }
 0x1f5   : > { %618 = vst.msk [vmem:[%s188_s20 + $0x10] sm:$0xff] %vm615_vm2, %v541_v30  ;;  %v793_v31 = vpop.f32.mrb[5].mxu1 }
 0x1f8   : > { %v611_v32 = vpop.f32.mrb[6].mxu1 }
 0x1f9   : > { %619 = vst.msk [vmem:[%s188_s20 + $0x18] sm:$0xff] %vm615_vm2, %v611_v32  ;;  %v800_v33 = vpop.f32.mrb[7].mxu1 }
 0x1fa   : > { %913 = shalt.err (!%p910_p2)
}
 0x1fb   : > { %s914_s4 = scalar_lea.hbm %s1144_s29, 512  ;;  %s918_s8 = scalar_lea.hbm %s1192_s3, 1024 }
 0x1fc   : > { %p915_p4 = scmp.ne.s32.totalorder %s1144_s29, %s914_s4  ;;  %p919_p9 = scmp.lt.u32.totalorder %s1144_s29, %s1192_s3 }
 0x1fd   : > { %p920_p1 = scmp.lt.u32.totalorder %s918_s8, %s914_s4  ;;  %p922_p6 = scmp.lt.u32.totalorder %s914_s4, %s1144_s29 }
 0x1fe   : > { %p916_p5 = pnand %p915_p4, %p1199_p11 }
 0x1ff   : > { %p921_p3 = por %p920_p1, %p919_p9 }
 0x200   : > { %p917_p7 = pneg %p916_p5 }
 0x201   : > { %p923_p12 = por %p922_p6, %p921_p3 }
 0x203   : > { %p924_p13 = pnand %p923_p12, %p917_p7 }
 0x205   : > { %927 = shalt.err (!%p924_p13)
}
 0x206   : > { %s975_s19 = smov 128   ;;  %s976_s20 = smov 8  }
 0x207   : > { %819 = dma.vmem_to_hbm [thread:$0]  (%p1199_p11), %s1138_s22, 512, %s1144_s29, %s621_s30, %s975_s19, %s975_s19, %s976_s20  }
 0x208 PF: > { %s649_s26 = sand.u32 1, %s954_s12   ;;  %p1200_p8 = scmp.ne.s32.totalorder %s1197_s25, 0 }
 0x209   : > { %p1201_p10 = scmp.ge.s32.totalorder %s966_s15, 2  ;;  %s650_s27 = scalar_lea.sflag [#allocation4], %s649_s26 }
 0x20b   : > { %p826_p0 = pnand %p1201_p10, %p1200_p8 }
 0x20d   : > { %949 = dma.done.wait (!%p826_p0), %s650_s27, 512  }
 0x20e   : > { %951 = vsyncadd (!%p826_p0), %s650_s27, 4294966784  ;;  %p16_p2 = scmp.ge.s32.totalorder %s1022_s18, 4   ;;  %s1202_s12 = smov %s958_s13 }
 0x20f   : > { %s1203_s13 = smov %s962_s14  ;;  %s1204_s14 = smov %s1034_s21 }
 0x210   : > { %s1205_s15 = smov %s1022_s18  ;;  %18 = sbr.rel (!%p16_p2) target bundleno = 5 (0x5), region = 77 }
 0x217   :  { %655 = vsyncpa [#allocation3], 1 }
 0x218   :  { %657 = vsyncpa [#allocation3 + $0x1], 1 }
 0x219   :  { %658 = vsyncpa [#allocation4], 1 }
 0x21a   :  { %660 = vsyncpa [#allocation4 + $0x1], 1 }

</bundles_post_ra>
